<compile_context>
chip_gen: v5e
topology: v5e:2x2
jax: 0.10.0
libtpu: 0.0.40
codegen_flags: <defaults>
</compile_context>

<pallas_src>
import jax
import jax.numpy as jnp
from jax import lax
from jax.experimental import pallas as pl
from jax.experimental.pallas import tpu as pltpu

EPS = 1e-5


# ----------------------------- Pallas kernels ------------------------------

def _conv_pool_stats_kernel(p_ref, w_ref, b_ref, t_ref, s_ref):
    """Fused conv (as matmul) + 2x2 max-pool + bias + ReLU + partial BN stats.

    p_ref: (4, K, TM) bf16   -- pool-corner im2col patches (K on sublanes,
                                positions on lanes -> lane-dense)
    w_ref: (CP, K)   bf16    -- flattened conv weights, rows padded with zeros
    b_ref: (CP, 1)   f32     -- bias column (may already contain folded BN)
    t_ref: (CP, TM)  f32     -- pooled + ReLU'd activations (lane-dense)
    s_ref: (CP, 2)   f32     -- per-channel [sum, sum-of-squares] for this block
    """
    w = w_ref[...]
    m = jnp.dot(w, p_ref[0], preferred_element_type=jnp.float32)
    for corner in range(1, 4):
        m = jnp.maximum(
            m, jnp.dot(w, p_ref[corner], preferred_element_type=jnp.float32))
    y = jnp.maximum(m + b_ref[...], 0.0)          # bias + ReLU after max-pool
    t_ref[...] = y
    s_ref[:, 0:1] = jnp.sum(y, axis=1, keepdims=True)
    s_ref[:, 1:2] = jnp.sum(y * y, axis=1, keepdims=True)


def _fc1_kernel(x_ref, w_ref, b_ref, h_ref, s_ref):
    """fc1 + ReLU + partial BatchNorm1d stats (per feature, over batch rows)."""
    h = jnp.dot(x_ref[...], w_ref[...], preferred_element_type=jnp.float32)
    h = jnp.maximum(h + b_ref[...], 0.0)
    h_ref[...] = h
    s_ref[0:1, :] = jnp.sum(h, axis=0, keepdims=True)
    s_ref[1:2, :] = jnp.sum(h * h, axis=0, keepdims=True)


def _head_final_kernel(h_ref, w2_ref, b2_ref, w3_ref, b3_ref, o_ref):
    """(BN2-folded) fc2 + ReLU + output layer."""
    h = h_ref[...].astype(jnp.bfloat16)
    d2 = jnp.dot(h, w2_ref[...], preferred_element_type=jnp.float32) + b2_ref[...]
    d2 = jnp.maximum(d2, 0.0)
    o_ref[...] = (
        jnp.dot(d2.astype(jnp.bfloat16), w3_ref[...],
                preferred_element_type=jnp.float32) + b3_ref[...]
    )


# ---------------------------- kernel wrappers -------------------------------

_PARALLEL = pltpu.CompilerParams(dimension_semantics=("parallel",))


def conv_pool_stage(patches, w, b, m_block):
    """patches (4,K,M) bf16, w (CP,K) bf16, b (CP,1) f32 -> t (CP,M), stats (nb,CP,2)."""
    _, K, M = patches.shape
    CP = w.shape[0]
    nb = M // m_block
    return pl.pallas_call(
        _conv_pool_stats_kernel,
        out_shape=(jax.ShapeDtypeStruct((CP, M), jnp.float32),
                   jax.ShapeDtypeStruct((nb, CP, 2), jnp.float32)),
        grid_spec=pltpu.PrefetchScalarGridSpec(
            num_scalar_prefetch=0,
            grid=(nb,),
            in_specs=[
                pl.BlockSpec((4, K, m_block), lambda i: (0, 0, i)),
                pl.BlockSpec((CP, K), lambda i: (0, 0)),   # weights VMEM-resident
                pl.BlockSpec((CP, 1), lambda i: (0, 0)),
            ],
            out_specs=[
                pl.BlockSpec((CP, m_block), lambda i: (0, i)),
                pl.BlockSpec((None, CP, 2), lambda i: (i, 0, 0)),
            ],
        ),
        compiler_params=_PARALLEL,
    )(patches, w, b)


def fc1_stage(x, w, b, b_block):
    Bp, F = x.shape
    N = w.shape[1]
    nb = Bp // b_block
    return pl.pallas_call(
        _fc1_kernel,
        out_shape=(jax.ShapeDtypeStruct((Bp, N), jnp.float32),
                   jax.ShapeDtypeStruct((nb, 2, N), jnp.float32)),
        grid_spec=pltpu.PrefetchScalarGridSpec(
            num_scalar_prefetch=0,
            grid=(nb,),
            in_specs=[
                pl.BlockSpec((b_block, F), lambda i: (i, 0)),
                pl.BlockSpec((F, N), lambda i: (0, 0)),
                pl.BlockSpec((1, N), lambda i: (0, 0)),
            ],
            out_specs=[
                pl.BlockSpec((b_block, N), lambda i: (i, 0)),
                pl.BlockSpec((None, 2, N), lambda i: (i, 0, 0)),
            ],
        ),
        compiler_params=_PARALLEL,
    )(x, w, b)


def head_final(h, w2, b2, w3, b3, b_block):
    Bp = h.shape[0]
    nb = Bp // b_block
    return pl.pallas_call(
        _head_final_kernel,
        out_shape=jax.ShapeDtypeStruct((Bp, w3.shape[1]), jnp.float32),
        grid_spec=pltpu.PrefetchScalarGridSpec(
            num_scalar_prefetch=0,
            grid=(nb,),
            in_specs=[
                pl.BlockSpec((b_block, h.shape[1]), lambda i: (i, 0)),
                pl.BlockSpec(w2.shape, lambda i: (0, 0)),
                pl.BlockSpec(b2.shape, lambda i: (0, 0)),
                pl.BlockSpec(w3.shape, lambda i: (0, 0)),
                pl.BlockSpec(b3.shape, lambda i: (0, 0)),
            ],
            out_specs=pl.BlockSpec((b_block, w3.shape[1]), lambda i: (i, 0)),
        ),
        compiler_params=_PARALLEL,
    )(h, w2, b2, w3, b3)


# ------------------------------- JAX glue -----------------------------------

def _pad_to(a, shape):
    return jnp.pad(a, [(0, s - d) for d, s in zip(a.shape, shape)])


def _flatten_like_patches(w):
    """Flatten conv weights (OC,C,kh,kw) -> (OC, C*kh*kw) in the *same* ordering
    that conv_general_dilated_patches uses for activations (ordering-agnostic)."""
    oc, c, kh, kw = w.shape
    wf = lax.conv_general_dilated_patches(
        w, (kh, kw), (1, 1), "VALID", precision=lax.Precision.HIGHEST)
    return wf.reshape(oc, c * kh * kw)


def pooled_corner_patches(x_nchw, kh, kw):
    """x (B,C,H,W) f32 -> (4, K=C*kh*kw, B*PH*PW) bf16, one patch matrix per
    2x2 pool corner; column order = (b, py, px)."""
    B = x_nchw.shape[0]
    p = lax.conv_general_dilated_patches(
        x_nchw, (kh, kw), (1, 1), "VALID",
        precision=lax.Precision.HIGHEST)               # (B, K, OH, OW)
    K, OH, OW = p.shape[1], p.shape[2], p.shape[3]
    PH, PW = OH // 2, OW // 2
    corners = [p[:, :, dy::2, dx::2] for dy in (0, 1) for dx in (0, 1)]
    pc = jnp.stack(corners, axis=0)                    # (4, B, K, PH, PW)
    pc = pc.transpose(0, 2, 1, 3, 4).reshape(4, K, B * PH * PW)
    return pc.astype(jnp.bfloat16)


def init_params(key):
    """Deterministic synthetic parameters with PyTorch-like shapes/init."""
    def unif(k, shape, fan_in):
        bound = float(fan_in) ** -0.5
        return jax.random.uniform(k, shape, jnp.float32, -bound, bound)

    ks = jax.random.split(key, 10)
    return {
        "conv1_w": unif(ks[0], (6, 1, 5, 5), 25),
        "conv1_b": unif(ks[1], (6,), 25),
        "bn1_g": jnp.ones((6,), jnp.float32),
        "bn1_b": jnp.zeros((6,), jnp.float32),
        "conv2_w": unif(ks[2], (12, 6, 5, 5), 150),
        "conv2_b": unif(ks[3], (12,), 150),
        "fc1_w": unif(ks[4], (192, 120), 192),     # stored (in, out)
        "fc1_b": unif(ks[5], (120,), 192),
        "bn2_g": jnp.ones((120,), jnp.float32),
        "bn2_b": jnp.zeros((120,), jnp.float32),
        "fc2_w": unif(ks[6], (120, 60), 120),
        "fc2_b": unif(ks[7], (60,), 120),
        "out_w": unif(ks[8], (60, 10), 60),
        "out_b": unif(ks[9], (10,), 60),
    }


@jax.jit
def network_forward(x, p):
    """x: (B, 1, 28, 28) NCHW f32 -> logits (B, 10) f32 (train-mode BN)."""
    B = x.shape[0]
    # Batch tile: 8 keeps every tiled block (8,128)-aligned; otherwise run the
    # whole batch as a single block (block shape == full array is always legal).
    tb = 8 if B % 8 == 0 else B

    # ---------------- conv1 + max_pool(2,2) + ReLU (+ BN1 partial stats) -----
    w1p = _pad_to(_flatten_like_patches(p["conv1_w"]), (8, 25)).astype(jnp.bfloat16)
    b1p = _pad_to(p["conv1_b"].reshape(6, 1), (8, 1))
    p1 = pooled_corner_patches(x, 5, 5)                      # (4, 25, B*144)
    t1, s1 = conv_pool_stage(p1, w1p, b1p, tb * 144)         # t1: (8, B*144)

    # ---------------- BN1 (exact full-batch stats) folded into conv2 ---------
    tot1 = jnp.sum(s1, axis=0)                               # (8, 2)
    cnt1 = jnp.float32(B * 144)
    mean1 = tot1[:6, 0] / cnt1
    var1 = jnp.maximum(tot1[:6, 1] / cnt1 - mean1 * mean1, 0.0)   # biased var
    scale1 = p["bn1_g"] * lax.rsqrt(var1 + EPS)
    shift1 = p["bn1_b"] - mean1 * scale1
    w2_eff = p["conv2_w"] * scale1[None, :, None, None]
    b2_eff = p["conv2_b"] + jnp.sum(
        p["conv2_w"] * shift1[None, :, None, None], axis=(1, 2, 3))

    # ---------------- conv2 + max_pool(2,2) + ReLU ---------------------------
    w2p = _pad_to(_flatten_like_patches(w2_eff), (16, 150)).astype(jnp.bfloat16)
    b2p = _pad_to(b2_eff.reshape(12, 1), (16, 1))
    t1_nchw = t1[:6].reshape(6, B, 12, 12).transpose(1, 0, 2, 3)   # (B,6,12,12)
    p2 = pooled_corner_patches(t1_nchw, 5, 5)                # (4, 150, B*16)
    t2, _ = conv_pool_stage(p2, w2p, b2p, tb * 16)           # (16, B*16); stats unused

    # ---------------- flatten (NCHW order) + fc1 + ReLU (+ BN2 stats) --------
    flat = t2[:12].reshape(12, B, 4, 4).transpose(1, 0, 2, 3).reshape(B, 192)
    flat = flat.astype(jnp.bfloat16)
    wf1p = _pad_to(p["fc1_w"], (192, 128)).astype(jnp.bfloat16)
    bf1p = _pad_to(p["fc1_b"].reshape(1, 120), (1, 128))
    h1, s2 = fc1_stage(flat, wf1p, bf1p, tb)                 # h1: (B, 128)

    # ---------------- BN2 (exact full-batch stats) folded into fc2 -----------
    tot2 = jnp.sum(s2, axis=0)                               # (2, 128)
    cnt2 = jnp.float32(B)
    mean2 = tot2[0] / cnt2
    var2 = jnp.maximum(tot2[1] / cnt2 - mean2 * mean2, 0.0)
    g2p = _pad_to(p["bn2_g"], (128,))                        # padded gamma == 0
    be2p = _pad_to(p["bn2_b"], (128,))
    scale2 = g2p * lax.rsqrt(var2 + EPS)
    shift2 = be2p - mean2 * scale2
    wf2p = _pad_to(p["fc2_w"], (128, 64))
    wf2_eff = (wf2p * scale2[:, None]).astype(jnp.bfloat16)
    bf2_eff = _pad_to(p["fc2_b"].reshape(1, 60), (1, 64)) + (shift2 @ wf2p).reshape(1, 64)
    wop = _pad_to(p["out_w"], (64, 10)).astype(jnp.bfloat16)
    bop = p["out_b"].reshape(1, 10)

    # ---------------- fc2 + ReLU + out ---------------------------------------
    return head_final(h1, wf2_eff, bf2_eff, wop, bop, tb)    # (B, 10)


if __name__ == "__main__":
    key = jax.random.PRNGKey(0)
    kx, kp = jax.random.split(key)
    # Input implied by the module: 1 channel, 28x28 (conv/pool chain -> 12*4*4).
    x = jax.random.normal(kx, (2, 1, 28, 28), dtype=jnp.float32)
    params = init_params(kp)

    out = jax.block_until_ready(network_forward(x, params))
    assert out.shape == (2, 10) and out.dtype == jnp.float32
    assert bool(jnp.all(jnp.isfinite(out)))
    print("KERNEL_OK")
</pallas_src>

<mosaic_0001>
module attributes {stable_mosaic.version = 11 : i64} {
  func.func @_conv_pool_stats_kernel(%arg0: i32, %arg1: memref<4x25x288xbf16, #tpu.memory_space<vmem>>, %arg2: memref<8x25xbf16, #tpu.memory_space<vmem>>, %arg3: memref<8x1xf32, #tpu.memory_space<vmem>>, %arg4: memref<8x288xf32, #tpu.memory_space<vmem>>, %arg5: memref<1x8x2xf32, #tpu.memory_space<vmem>>) attributes {dimension_semantics = [#tpu.dimension_semantics<parallel>], iteration_bounds = array<i64: 1>, scalar_prefetch = 0 : i64, scratch_operands = 0 : i64, tpu.core_type = #tpu.core_type<tc>, window_params = [{transform_indices = @transform_0, window_bounds = array<i64: 4, 25, 288>}, {pipeline_mode = #tpu.pipeline_mode<synchronous>, transform_indices = @transform_1, window_bounds = array<i64: 8, 25>}, {pipeline_mode = #tpu.pipeline_mode<synchronous>, transform_indices = @transform_2, window_bounds = array<i64: 8, 1>}, {transform_indices = @transform_3, window_bounds = array<i64: 8, 288>}, {transform_indices = @transform_4, window_bounds = array<i64: 1, 8, 2>}]} {
    %c0 = arith.constant 0 : index
    %c0_0 = arith.constant 0 : index
    %0 = vector.load %arg2[%c0, %c0_0] : memref<8x25xbf16, #tpu.memory_space<vmem>>, vector<8x25xbf16>
    %c0_1 = arith.constant 0 : index
    %c0_2 = arith.constant 0 : index
    %c0_3 = arith.constant 0 : index
    %1 = vector.load %arg1[%c0_1, %c0_2, %c0_3] : memref<4x25x288xbf16, #tpu.memory_space<vmem>>, vector<1x25x288xbf16>
    %2 = vector.shape_cast %1 : vector<1x25x288xbf16> to vector<25x288xbf16>
    %cst = arith.constant dense<0.000000e+00> : vector<8x288xf32>
    %3 = tpu.matmul %0, %2, %cst {dimension_numbers = #tpu.dot_dimension_numbers<[1], [0], [0], [1], [0, 0, 1, 1], [], []>} : vector<8x25xbf16>, vector<25x288xbf16>, vector<8x288xf32> -> vector<8x288xf32>
    %c1 = arith.constant 1 : index
    %c0_4 = arith.constant 0 : index
    %c0_5 = arith.constant 0 : index
    %4 = vector.load %arg1[%c1, %c0_4, %c0_5] : memref<4x25x288xbf16, #tpu.memory_space<vmem>>, vector<1x25x288xbf16>
    %5 = vector.shape_cast %4 : vector<1x25x288xbf16> to vector<25x288xbf16>
    %cst_6 = arith.constant dense<0.000000e+00> : vector<8x288xf32>
    %6 = tpu.matmul %0, %5, %cst_6 {dimension_numbers = #tpu.dot_dimension_numbers<[1], [0], [0], [1], [0, 0, 1, 1], [], []>} : vector<8x25xbf16>, vector<25x288xbf16>, vector<8x288xf32> -> vector<8x288xf32>
    %7 = arith.maximumf %3, %6 : vector<8x288xf32>
    %c2 = arith.constant 2 : index
    %c0_7 = arith.constant 0 : index
    %c0_8 = arith.constant 0 : index
    %8 = vector.load %arg1[%c2, %c0_7, %c0_8] : memref<4x25x288xbf16, #tpu.memory_space<vmem>>, vector<1x25x288xbf16>
    %9 = vector.shape_cast %8 : vector<1x25x288xbf16> to vector<25x288xbf16>
    %cst_9 = arith.constant dense<0.000000e+00> : vector<8x288xf32>
    %10 = tpu.matmul %0, %9, %cst_9 {dimension_numbers = #tpu.dot_dimension_numbers<[1], [0], [0], [1], [0, 0, 1, 1], [], []>} : vector<8x25xbf16>, vector<25x288xbf16>, vector<8x288xf32> -> vector<8x288xf32>
    %11 = arith.maximumf %7, %10 : vector<8x288xf32>
    %c3 = arith.constant 3 : index
    %c0_10 = arith.constant 0 : index
    %c0_11 = arith.constant 0 : index
    %12 = vector.load %arg1[%c3, %c0_10, %c0_11] : memref<4x25x288xbf16, #tpu.memory_space<vmem>>, vector<1x25x288xbf16>
    %13 = vector.shape_cast %12 : vector<1x25x288xbf16> to vector<25x288xbf16>
    %cst_12 = arith.constant dense<0.000000e+00> : vector<8x288xf32>
    %14 = tpu.matmul %0, %13, %cst_12 {dimension_numbers = #tpu.dot_dimension_numbers<[1], [0], [0], [1], [0, 0, 1, 1], [], []>} : vector<8x25xbf16>, vector<25x288xbf16>, vector<8x288xf32> -> vector<8x288xf32>
    %15 = arith.maximumf %11, %14 : vector<8x288xf32>
    %c0_13 = arith.constant 0 : index
    %c0_14 = arith.constant 0 : index
    %16 = vector.load %arg3[%c0_13, %c0_14] : memref<8x1xf32, #tpu.memory_space<vmem>>, vector<8x1xf32>
    %17 = vector.broadcast %16 : vector<8x1xf32> to vector<8x288xf32>
    %18 = arith.addf %15, %17 : vector<8x288xf32>
    %cst_15 = arith.constant 0.000000e+00 : f32
    %19 = vector.broadcast %cst_15 : f32 to vector<8x288xf32>
    %20 = arith.maximumf %18, %19 : vector<8x288xf32>
    %c0_16 = arith.constant 0 : index
    %c0_17 = arith.constant 0 : index
    %21 = vector.load %arg4[%c0_16, %c0_17] : memref<8x288xf32, #tpu.memory_space<vmem>>, vector<8x288xf32>
    tpu.vector_store %arg4[%c0_16, %c0_17], %20 {strides = array<i32>} : memref<8x288xf32, #tpu.memory_space<vmem>>, vector<8x288xf32>,
    %cst_18 = arith.constant dense<0.000000e+00> : vector<8xf32>
    %22 = vector.multi_reduction <add>, %20, %cst_18 [1] : vector<8x288xf32> to vector<8xf32>
    %23 = vector.shape_cast %22 : vector<8xf32> to vector<8x1xf32>
    %c0_19 = arith.constant 0 : index
    %c0_20 = arith.constant 0 : index
    %c0_21 = arith.constant 0 : index
    %24 = vector.load %arg5[%c0_19, %c0_20, %c0_21] : memref<1x8x2xf32, #tpu.memory_space<vmem>>, vector<1x8x1xf32>
    %25 = vector.shape_cast %24 : vector<1x8x1xf32> to vector<8x1xf32>
    %26 = vector.shape_cast %23 : vector<8x1xf32> to vector<1x8x1xf32>
    tpu.vector_store %arg5[%c0_19, %c0_20, %c0_21], %26 {strides = array<i32>} : memref<1x8x2xf32, #tpu.memory_space<vmem>>, vector<1x8x1xf32>,
    %27 = arith.mulf %20, %20 : vector<8x288xf32>
    %cst_22 = arith.constant dense<0.000000e+00> : vector<8xf32>
    %28 = vector.multi_reduction <add>, %27, %cst_22 [1] : vector<8x288xf32> to vector<8xf32>
    %29 = vector.shape_cast %28 : vector<8xf32> to vector<8x1xf32>
    %c0_23 = arith.constant 0 : index
    %c0_24 = arith.constant 0 : index
    %c1_25 = arith.constant 1 : index
    %30 = vector.load %arg5[%c0_23, %c0_24, %c1_25] : memref<1x8x2xf32, #tpu.memory_space<vmem>>, vector<1x8x1xf32>
    %31 = vector.shape_cast %30 : vector<1x8x1xf32> to vector<8x1xf32>
    %32 = vector.shape_cast %29 : vector<8x1xf32> to vector<1x8x1xf32>
    tpu.vector_store %arg5[%c0_23, %c0_24, %c1_25], %32 {strides = array<i32>} : memref<1x8x2xf32, #tpu.memory_space<vmem>>, vector<1x8x1xf32>,
    return
  }
  func.func @transform_0(%arg0: i32) -> (i32, i32, i32) {
    %c0_i32 = arith.constant 0 : i32
    %c0_i32_0 = arith.constant 0 : i32
    %c0_i32_1 = arith.constant 0 : i32
    return %c0_i32, %c0_i32_0, %arg0 : i32, i32, i32
  }
  func.func @transform_1(%arg0: i32) -> (i32, i32) {
    %c0_i32 = arith.constant 0 : i32
    %c0_i32_0 = arith.constant 0 : i32
    %c0_i32_1 = arith.constant 0 : i32
    return %c0_i32, %c0_i32_0 : i32, i32
  }
  func.func @transform_2(%arg0: i32) -> (i32, i32) {
    %c0_i32 = arith.constant 0 : i32
    %c0_i32_0 = arith.constant 0 : i32
    %c0_i32_1 = arith.constant 0 : i32
    return %c0_i32, %c0_i32_0 : i32, i32
  }
  func.func @transform_3(%arg0: i32) -> (i32, i32) {
    %c0_i32 = arith.constant 0 : i32
    %c0_i32_0 = arith.constant 0 : i32
    return %c0_i32, %arg0 : i32, i32
  }
  func.func @transform_4(%arg0: i32) -> (i32, i32, i32) {
    %c0_i32 = arith.constant 0 : i32
    %c0_i32_0 = arith.constant 0 : i32
    %c0_i32_1 = arith.constant 0 : i32
    return %arg0, %c0_i32, %c0_i32_0 : i32, i32, i32
  }
}

module attributes {stable_mosaic.version = 11 : i64} {
  func.func @_conv_pool_stats_kernel(%arg0: i32, %arg1: memref<4x150x32xbf16, #tpu.memory_space<vmem>>, %arg2: memref<16x150xbf16, #tpu.memory_space<vmem>>, %arg3: memref<16x1xf32, #tpu.memory_space<vmem>>, %arg4: memref<16x32xf32, #tpu.memory_space<vmem>>, %arg5: memref<1x16x2xf32, #tpu.memory_space<vmem>>) attributes {dimension_semantics = [#tpu.dimension_semantics<parallel>], iteration_bounds = array<i64: 1>, scalar_prefetch = 0 : i64, scratch_operands = 0 : i64, tpu.core_type = #tpu.core_type<tc>, window_params = [{transform_indices = @transform_0, window_bounds = array<i64: 4, 150, 32>}, {pipeline_mode = #tpu.pipeline_mode<synchronous>, transform_indices = @transform_1, window_bounds = array<i64: 16, 150>}, {pipeline_mode = #tpu.pipeline_mode<synchronous>, transform_indices = @transform_2, window_bounds = array<i64: 16, 1>}, {transform_indices = @transform_3, window_bounds = array<i64: 16, 32>}, {transform_indices = @transform_4, window_bounds = array<i64: 1, 16, 2>}]} {
    %c0 = arith.constant 0 : index
    %c0_0 = arith.constant 0 : index
    %0 = vector.load %arg2[%c0, %c0_0] : memref<16x150xbf16, #tpu.memory_space<vmem>>, vector<16x150xbf16>
    %c0_1 = arith.constant 0 : index
    %c0_2 = arith.constant 0 : index
    %c0_3 = arith.constant 0 : index
    %1 = vector.load %arg1[%c0_1, %c0_2, %c0_3] : memref<4x150x32xbf16, #tpu.memory_space<vmem>>, vector<1x150x32xbf16>
    %2 = vector.shape_cast %1 : vector<1x150x32xbf16> to vector<150x32xbf16>
    %cst = arith.constant dense<0.000000e+00> : vector<16x32xf32>
    %3 = tpu.matmul %0, %2, %cst {dimension_numbers = #tpu.dot_dimension_numbers<[1], [0], [0], [1], [0, 0, 1, 1], [], []>} : vector<16x150xbf16>, vector<150x32xbf16>, vector<16x32xf32> -> vector<16x32xf32>
    %c1 = arith.constant 1 : index
    %c0_4 = arith.constant 0 : index
    %c0_5 = arith.constant 0 : index
    %4 = vector.load %arg1[%c1, %c0_4, %c0_5] : memref<4x150x32xbf16, #tpu.memory_space<vmem>>, vector<1x150x32xbf16>
    %5 = vector.shape_cast %4 : vector<1x150x32xbf16> to vector<150x32xbf16>
    %cst_6 = arith.constant dense<0.000000e+00> : vector<16x32xf32>
    %6 = tpu.matmul %0, %5, %cst_6 {dimension_numbers = #tpu.dot_dimension_numbers<[1], [0], [0], [1], [0, 0, 1, 1], [], []>} : vector<16x150xbf16>, vector<150x32xbf16>, vector<16x32xf32> -> vector<16x32xf32>
    %7 = arith.maximumf %3, %6 : vector<16x32xf32>
    %c2 = arith.constant 2 : index
    %c0_7 = arith.constant 0 : index
    %c0_8 = arith.constant 0 : index
    %8 = vector.load %arg1[%c2, %c0_7, %c0_8] : memref<4x150x32xbf16, #tpu.memory_space<vmem>>, vector<1x150x32xbf16>
    %9 = vector.shape_cast %8 : vector<1x150x32xbf16> to vector<150x32xbf16>
    %cst_9 = arith.constant dense<0.000000e+00> : vector<16x32xf32>
    %10 = tpu.matmul %0, %9, %cst_9 {dimension_numbers = #tpu.dot_dimension_numbers<[1], [0], [0], [1], [0, 0, 1, 1], [], []>} : vector<16x150xbf16>, vector<150x32xbf16>, vector<16x32xf32> -> vector<16x32xf32>
    %11 = arith.maximumf %7, %10 : vector<16x32xf32>
    %c3 = arith.constant 3 : index
    %c0_10 = arith.constant 0 : index
    %c0_11 = arith.constant 0 : index
    %12 = vector.load %arg1[%c3, %c0_10, %c0_11] : memref<4x150x32xbf16, #tpu.memory_space<vmem>>, vector<1x150x32xbf16>
    %13 = vector.shape_cast %12 : vector<1x150x32xbf16> to vector<150x32xbf16>
    %cst_12 = arith.constant dense<0.000000e+00> : vector<16x32xf32>
    %14 = tpu.matmul %0, %13, %cst_12 {dimension_numbers = #tpu.dot_dimension_numbers<[1], [0], [0], [1], [0, 0, 1, 1], [], []>} : vector<16x150xbf16>, vector<150x32xbf16>, vector<16x32xf32> -> vector<16x32xf32>
    %15 = arith.maximumf %11, %14 : vector<16x32xf32>
    %c0_13 = arith.constant 0 : index
    %c0_14 = arith.constant 0 : index
    %16 = vector.load %arg3[%c0_13, %c0_14] : memref<16x1xf32, #tpu.memory_space<vmem>>, vector<16x1xf32>
    %17 = vector.broadcast %16 : vector<16x1xf32> to vector<16x32xf32>
    %18 = arith.addf %15, %17 : vector<16x32xf32>
    %cst_15 = arith.constant 0.000000e+00 : f32
    %19 = vector.broadcast %cst_15 : f32 to vector<16x32xf32>
    %20 = arith.maximumf %18, %19 : vector<16x32xf32>
    %c0_16 = arith.constant 0 : index
    %c0_17 = arith.constant 0 : index
    %21 = vector.load %arg4[%c0_16, %c0_17] : memref<16x32xf32, #tpu.memory_space<vmem>>, vector<16x32xf32>
    tpu.vector_store %arg4[%c0_16, %c0_17], %20 {strides = array<i32>} : memref<16x32xf32, #tpu.memory_space<vmem>>, vector<16x32xf32>,
    %cst_18 = arith.constant dense<0.000000e+00> : vector<16xf32>
    %22 = vector.multi_reduction <add>, %20, %cst_18 [1] : vector<16x32xf32> to vector<16xf32>
    %23 = vector.shape_cast %22 : vector<16xf32> to vector<16x1xf32>
    %c0_19 = arith.constant 0 : index
    %c0_20 = arith.constant 0 : index
    %c0_21 = arith.constant 0 : index
    %24 = vector.load %arg5[%c0_19, %c0_20, %c0_21] : memref<1x16x2xf32, #tpu.memory_space<vmem>>, vector<1x16x1xf32>
    %25 = vector.shape_cast %24 : vector<1x16x1xf32> to vector<16x1xf32>
    %26 = vector.shape_cast %23 : vector<16x1xf32> to vector<1x16x1xf32>
    tpu.vector_store %arg5[%c0_19, %c0_20, %c0_21], %26 {strides = array<i32>} : memref<1x16x2xf32, #tpu.memory_space<vmem>>, vector<1x16x1xf32>,
    %27 = arith.mulf %20, %20 : vector<16x32xf32>
    %cst_22 = arith.constant dense<0.000000e+00> : vector<16xf32>
    %28 = vector.multi_reduction <add>, %27, %cst_22 [1] : vector<16x32xf32> to vector<16xf32>
    %29 = vector.shape_cast %28 : vector<16xf32> to vector<16x1xf32>
    %c0_23 = arith.constant 0 : index
    %c0_24 = arith.constant 0 : index
    %c1_25 = arith.constant 1 : index
    %30 = vector.load %arg5[%c0_23, %c0_24, %c1_25] : memref<1x16x2xf32, #tpu.memory_space<vmem>>, vector<1x16x1xf32>
    %31 = vector.shape_cast %30 : vector<1x16x1xf32> to vector<16x1xf32>
    %32 = vector.shape_cast %29 : vector<16x1xf32> to vector<1x16x1xf32>
    tpu.vector_store %arg5[%c0_23, %c0_24, %c1_25], %32 {strides = array<i32>} : memref<1x16x2xf32, #tpu.memory_space<vmem>>, vector<1x16x1xf32>,
    return
  }
  func.func @transform_0(%arg0: i32) -> (i32, i32, i32) {
    %c0_i32 = arith.constant 0 : i32
    %c0_i32_0 = arith.constant 0 : i32
    %c0_i32_1 = arith.constant 0 : i32
    return %c0_i32, %c0_i32_0, %arg0 : i32, i32, i32
  }
  func.func @transform_1(%arg0: i32) -> (i32, i32) {
    %c0_i32 = arith.constant 0 : i32
    %c0_i32_0 = arith.constant 0 : i32
    %c0_i32_1 = arith.constant 0 : i32
    return %c0_i32, %c0_i32_0 : i32, i32
  }
  func.func @transform_2(%arg0: i32) -> (i32, i32) {
    %c0_i32 = arith.constant 0 : i32
    %c0_i32_0 = arith.constant 0 : i32
    %c0_i32_1 = arith.constant 0 : i32
    return %c0_i32, %c0_i32_0 : i32, i32
  }
  func.func @transform_3(%arg0: i32) -> (i32, i32) {
    %c0_i32 = arith.constant 0 : i32
    %c0_i32_0 = arith.constant 0 : i32
    return %c0_i32, %arg0 : i32, i32
  }
  func.func @transform_4(%arg0: i32) -> (i32, i32, i32) {
    %c0_i32 = arith.constant 0 : i32
    %c0_i32_0 = arith.constant 0 : i32
    %c0_i32_1 = arith.constant 0 : i32
    return %arg0, %c0_i32, %c0_i32_0 : i32, i32, i32
  }
}

module attributes {stable_mosaic.version = 11 : i64} {
  func.func @_fc1_kernel(%arg0: i32, %arg1: memref<2x192xbf16, #tpu.memory_space<vmem>>, %arg2: memref<192x128xbf16, #tpu.memory_space<vmem>>, %arg3: memref<1x128xf32, #tpu.memory_space<vmem>>, %arg4: memref<2x128xf32, #tpu.memory_space<vmem>>, %arg5: memref<1x2x128xf32, #tpu.memory_space<vmem>>) attributes {dimension_semantics = [#tpu.dimension_semantics<parallel>], iteration_bounds = array<i64: 1>, scalar_prefetch = 0 : i64, scratch_operands = 0 : i64, tpu.core_type = #tpu.core_type<tc>, window_params = [{transform_indices = @transform_0, window_bounds = array<i64: 2, 192>}, {pipeline_mode = #tpu.pipeline_mode<synchronous>, transform_indices = @transform_1, window_bounds = array<i64: 192, 128>}, {pipeline_mode = #tpu.pipeline_mode<synchronous>, transform_indices = @transform_2, window_bounds = array<i64: 1, 128>}, {transform_indices = @transform_3, window_bounds = array<i64: 2, 128>}, {transform_indices = @transform_4, window_bounds = array<i64: 1, 2, 128>}]} {
    %c0 = arith.constant 0 : index
    %c0_0 = arith.constant 0 : index
    %0 = vector.load %arg1[%c0, %c0_0] : memref<2x192xbf16, #tpu.memory_space<vmem>>, vector<2x192xbf16>
    %c0_1 = arith.constant 0 : index
    %c0_2 = arith.constant 0 : index
    %1 = vector.load %arg2[%c0_1, %c0_2] : memref<192x128xbf16, #tpu.memory_space<vmem>>, vector<192x128xbf16>
    %cst = arith.constant dense<0.000000e+00> : vector<2x128xf32>
    %2 = tpu.matmul %0, %1, %cst {dimension_numbers = #tpu.dot_dimension_numbers<[1], [0], [0], [1], [0, 0, 1, 1], [], []>} : vector<2x192xbf16>, vector<192x128xbf16>, vector<2x128xf32> -> vector<2x128xf32>
    %c0_3 = arith.constant 0 : index
    %c0_4 = arith.constant 0 : index
    %3 = vector.load %arg3[%c0_3, %c0_4] : memref<1x128xf32, #tpu.memory_space<vmem>>, vector<1x128xf32>
    %4 = vector.broadcast %3 : vector<1x128xf32> to vector<2x128xf32>
    %5 = arith.addf %2, %4 : vector<2x128xf32>
    %cst_5 = arith.constant 0.000000e+00 : f32
    %6 = vector.broadcast %cst_5 : f32 to vector<2x128xf32>
    %7 = arith.maximumf %5, %6 : vector<2x128xf32>
    %c0_6 = arith.constant 0 : index
    %c0_7 = arith.constant 0 : index
    %8 = vector.load %arg4[%c0_6, %c0_7] : memref<2x128xf32, #tpu.memory_space<vmem>>, vector<2x128xf32>
    tpu.vector_store %arg4[%c0_6, %c0_7], %7 {strides = array<i32>} : memref<2x128xf32, #tpu.memory_space<vmem>>, vector<2x128xf32>,
    %cst_8 = arith.constant dense<0.000000e+00> : vector<128xf32>
    %9 = vector.multi_reduction <add>, %7, %cst_8 [0] : vector<2x128xf32> to vector<128xf32>
    %10 = vector.shape_cast %9 : vector<128xf32> to vector<1x128xf32>
    %c0_9 = arith.constant 0 : index
    %c0_10 = arith.constant 0 : index
    %c0_11 = arith.constant 0 : index
    %11 = vector.load %arg5[%c0_9, %c0_10, %c0_11] : memref<1x2x128xf32, #tpu.memory_space<vmem>>, vector<1x1x128xf32>
    %12 = vector.shape_cast %11 : vector<1x1x128xf32> to vector<1x128xf32>
    %13 = vector.shape_cast %10 : vector<1x128xf32> to vector<1x1x128xf32>
    tpu.vector_store %arg5[%c0_9, %c0_10, %c0_11], %13 {strides = array<i32>} : memref<1x2x128xf32, #tpu.memory_space<vmem>>, vector<1x1x128xf32>,
    %14 = arith.mulf %7, %7 : vector<2x128xf32>
    %cst_12 = arith.constant dense<0.000000e+00> : vector<128xf32>
    %15 = vector.multi_reduction <add>, %14, %cst_12 [0] : vector<2x128xf32> to vector<128xf32>
    %16 = vector.shape_cast %15 : vector<128xf32> to vector<1x128xf32>
    %c0_13 = arith.constant 0 : index
    %c1 = arith.constant 1 : index
    %c0_14 = arith.constant 0 : index
    %17 = vector.load %arg5[%c0_13, %c1, %c0_14] : memref<1x2x128xf32, #tpu.memory_space<vmem>>, vector<1x1x128xf32>
    %18 = vector.shape_cast %17 : vector<1x1x128xf32> to vector<1x128xf32>
    %19 = vector.shape_cast %16 : vector<1x128xf32> to vector<1x1x128xf32>
    tpu.vector_store %arg5[%c0_13, %c1, %c0_14], %19 {strides = array<i32>} : memref<1x2x128xf32, #tpu.memory_space<vmem>>, vector<1x1x128xf32>,
    return
  }
  func.func @transform_0(%arg0: i32) -> (i32, i32) {
    %c0_i32 = arith.constant 0 : i32
    %c0_i32_0 = arith.constant 0 : i32
    return %arg0, %c0_i32 : i32, i32
  }
  func.func @transform_1(%arg0: i32) -> (i32, i32) {
    %c0_i32 = arith.constant 0 : i32
    %c0_i32_0 = arith.constant 0 : i32
    %c0_i32_1 = arith.constant 0 : i32
    return %c0_i32, %c0_i32_0 : i32, i32
  }
  func.func @transform_2(%arg0: i32) -> (i32, i32) {
    %c0_i32 = arith.constant 0 : i32
    %c0_i32_0 = arith.constant 0 : i32
    %c0_i32_1 = arith.constant 0 : i32
    return %c0_i32, %c0_i32_0 : i32, i32
  }
  func.func @transform_3(%arg0: i32) -> (i32, i32) {
    %c0_i32 = arith.constant 0 : i32
    %c0_i32_0 = arith.constant 0 : i32
    return %arg0, %c0_i32 : i32, i32
  }
  func.func @transform_4(%arg0: i32) -> (i32, i32, i32) {
    %c0_i32 = arith.constant 0 : i32
    %c0_i32_0 = arith.constant 0 : i32
    %c0_i32_1 = arith.constant 0 : i32
    return %arg0, %c0_i32, %c0_i32_0 : i32, i32, i32
  }
}

module attributes {stable_mosaic.version = 11 : i64} {
  func.func @_head_final_kernel(%arg0: i32, %arg1: memref<2x128xf32, #tpu.memory_space<vmem>>, %arg2: memref<128x64xbf16, #tpu.memory_space<vmem>>, %arg3: memref<1x64xf32, #tpu.memory_space<vmem>>, %arg4: memref<64x10xbf16, #tpu.memory_space<vmem>>, %arg5: memref<1x10xf32, #tpu.memory_space<vmem>>, %arg6: memref<2x10xf32, #tpu.memory_space<vmem>>) attributes {dimension_semantics = [#tpu.dimension_semantics<parallel>], iteration_bounds = array<i64: 1>, scalar_prefetch = 0 : i64, scratch_operands = 0 : i64, tpu.core_type = #tpu.core_type<tc>, window_params = [{transform_indices = @transform_0, window_bounds = array<i64: 2, 128>}, {pipeline_mode = #tpu.pipeline_mode<synchronous>, transform_indices = @transform_1, window_bounds = array<i64: 128, 64>}, {pipeline_mode = #tpu.pipeline_mode<synchronous>, transform_indices = @transform_2, window_bounds = array<i64: 1, 64>}, {pipeline_mode = #tpu.pipeline_mode<synchronous>, transform_indices = @transform_3, window_bounds = array<i64: 64, 10>}, {pipeline_mode = #tpu.pipeline_mode<synchronous>, transform_indices = @transform_4, window_bounds = array<i64: 1, 10>}, {transform_indices = @transform_5, window_bounds = array<i64: 2, 10>}]} {
    %c0 = arith.constant 0 : index
    %c0_0 = arith.constant 0 : index
    %0 = vector.load %arg1[%c0, %c0_0] : memref<2x128xf32, #tpu.memory_space<vmem>>, vector<2x128xf32>
    %1 = arith.truncf %0 : vector<2x128xf32> to vector<2x128xbf16>
    %c0_1 = arith.constant 0 : index
    %c0_2 = arith.constant 0 : index
    %2 = vector.load %arg2[%c0_1, %c0_2] : memref<128x64xbf16, #tpu.memory_space<vmem>>, vector<128x64xbf16>
    %cst = arith.constant dense<0.000000e+00> : vector<2x64xf32>
    %3 = tpu.matmul %1, %2, %cst {dimension_numbers = #tpu.dot_dimension_numbers<[1], [0], [0], [1], [0, 0, 1, 1], [], []>} : vector<2x128xbf16>, vector<128x64xbf16>, vector<2x64xf32> -> vector<2x64xf32>
    %c0_3 = arith.constant 0 : index
    %c0_4 = arith.constant 0 : index
    %4 = vector.load %arg3[%c0_3, %c0_4] : memref<1x64xf32, #tpu.memory_space<vmem>>, vector<1x64xf32>
    %5 = vector.broadcast %4 : vector<1x64xf32> to vector<2x64xf32>
    %6 = arith.addf %3, %5 : vector<2x64xf32>
    %cst_5 = arith.constant 0.000000e+00 : f32
    %7 = vector.broadcast %cst_5 : f32 to vector<2x64xf32>
    %8 = arith.maximumf %6, %7 : vector<2x64xf32>
    %9 = arith.truncf %8 : vector<2x64xf32> to vector<2x64xbf16>
    %c0_6 = arith.constant 0 : index
    %c0_7 = arith.constant 0 : index
    %10 = vector.load %arg4[%c0_6, %c0_7] : memref<64x10xbf16, #tpu.memory_space<vmem>>, vector<64x10xbf16>
    %cst_8 = arith.constant dense<0.000000e+00> : vector<2x10xf32>
    %11 = tpu.matmul %9, %10, %cst_8 {dimension_numbers = #tpu.dot_dimension_numbers<[1], [0], [0], [1], [0, 0, 1, 1], [], []>} : vector<2x64xbf16>, vector<64x10xbf16>, vector<2x10xf32> -> vector<2x10xf32>
    %c0_9 = arith.constant 0 : index
    %c0_10 = arith.constant 0 : index
    %12 = vector.load %arg5[%c0_9, %c0_10] : memref<1x10xf32, #tpu.memory_space<vmem>>, vector<1x10xf32>
    %13 = vector.broadcast %12 : vector<1x10xf32> to vector<2x10xf32>
    %14 = arith.addf %11, %13 : vector<2x10xf32>
    %c0_11 = arith.constant 0 : index
    %c0_12 = arith.constant 0 : index
    %15 = vector.load %arg6[%c0_11, %c0_12] : memref<2x10xf32, #tpu.memory_space<vmem>>, vector<2x10xf32>
    tpu.vector_store %arg6[%c0_11, %c0_12], %14 {strides = array<i32>} : memref<2x10xf32, #tpu.memory_space<vmem>>, vector<2x10xf32>,
    return
  }
  func.func @transform_0(%arg0: i32) -> (i32, i32) {
    %c0_i32 = arith.constant 0 : i32
    %c0_i32_0 = arith.constant 0 : i32
    return %arg0, %c0_i32 : i32, i32
  }
  func.func @transform_1(%arg0: i32) -> (i32, i32) {
    %c0_i32 = arith.constant 0 : i32
    %c0_i32_0 = arith.constant 0 : i32
    %c0_i32_1 = arith.constant 0 : i32
    return %c0_i32, %c0_i32_0 : i32, i32
  }
  func.func @transform_2(%arg0: i32) -> (i32, i32) {
    %c0_i32 = arith.constant 0 : i32
    %c0_i32_0 = arith.constant 0 : i32
    %c0_i32_1 = arith.constant 0 : i32
    return %c0_i32, %c0_i32_0 : i32, i32
  }
  func.func @transform_3(%arg0: i32) -> (i32, i32) {
    %c0_i32 = arith.constant 0 : i32
    %c0_i32_0 = arith.constant 0 : i32
    %c0_i32_1 = arith.constant 0 : i32
    return %c0_i32, %c0_i32_0 : i32, i32
  }
  func.func @transform_4(%arg0: i32) -> (i32, i32) {
    %c0_i32 = arith.constant 0 : i32
    %c0_i32_0 = arith.constant 0 : i32
    %c0_i32_1 = arith.constant 0 : i32
    return %c0_i32, %c0_i32_0 : i32, i32
  }
  func.func @transform_5(%arg0: i32) -> (i32, i32) {
    %c0_i32 = arith.constant 0 : i32
    %c0_i32_0 = arith.constant 0 : i32
    return %arg0, %c0_i32 : i32, i32
  }
}

</mosaic_0001>

<bundles_post_ra>
// kernel: network_forward.4
= control target key start
LH: loop header
LB: loop body
LE: loop exit
PB: predicated region body
PF: predicated region fallthrough
CT: control target
= control target key end

     0   :  { %vm59_vm0 = vcmask 1043456   ;;  %vm60_vm1 = vcmask 1044480   ;;  %v578_v2 = vmov 65535   ;;  %vm55_vm2 = vcmask 203776   ;;  %s810_s0 = inlined_call_operand.vmem [shape: bf16[4,25,288], index: 0, kind: input, shape index: {}]   ;;  %s811_s1 = inlined_call_operand.vmem [shape: bf16[8,25], index: 1, kind: input, shape index: {}]   ;;  %s812_s2 = inlined_call_operand.vmem [shape: f32[8,1], index: 2, kind: input, shape index: {}]   ;;  %s813_s3 = inlined_call_operand.vmem [shape: f32[8,288], index: 3, kind: output, shape index: {0}]   ;;  %s814_s4 = inlined_call_operand.vmem [shape: f32[1,8,2], index: 4, kind: output, shape index: {1}]  }
   0x1   :  { %v433_v0 = vld [vmem:[%s810_s0 + $0x18] sm:$0xf]  ;;  %v555_v1 = vld [vmem:[%s810_s0 + $0x20] sm:$0x10]  ;;  %v61_v3 = vsel %vm59_vm0, 4294967295, %v578_v2  ;;  %vm392_vm3 = vcmask 261120  }
   0x2   :  { %v434_v4 = vor.u32 %v555_v1, %v433_v0  ;;  %v611_v5 = vsel %vm60_vm1, %v61_v3, 0  ;;  %v554_v6 = vld [vmem:[%s810_s0 + $0x1c] sm:$0xf]  ;;  %v435_v7 = vld [vmem:[%s810_s0 + $0x24] sm:$0x10]  ;;  %vm399_vm4 = vcmask 7168  }
   0x3   :  { %v438_v8 = vor.u32 %v554_v6, %v435_v7  ;;  %v441_v9 = vld [vmem:[%s810_s0 + $0x20] sm:$0xf]  ;;  %v556_v10 = vld [vmem:[%s810_s0 + $0x28] sm:$0x10]  ;;  %v468_v11 = vld [vmem:[%s810_s0 + $0x48] sm:$0xf] }
   0x4   :  { %v64_v12 = vand.u32 %v434_v4, %v611_v5  ;;  %v442_v13 = vor.u32 %v556_v10, %v441_v9  ;;  %v561_v14 = vld [vmem:[%s810_s0 + $0x50] sm:$0x10]  ;;  %v421_v15 = vld [vmem:[%s810_s0] sm:$0xf]  ;;  %v552_v16 = vld [vmem:[%s810_s0 + $0x8] sm:$0xf0] }
   0x5   :  { %v67_v17 = vand.u32 %v438_v8, %v611_v5  ;;  %v469_v18 = vor.u32 %v561_v14, %v468_v11  ;;  %v551_v19 = vld [vmem:[%s810_s0 + $0x4] sm:$0xf]  ;;  %v423_v20 = vld [vmem:[%s810_s0 + $0xc] sm:$0xf0]  ;;  %v429_v21 = vld [vmem:[%s810_s0 + $0x8] sm:$0xf]  ;;  %v422_v23 = vor.u32 %v552_v16, %v421_v15 }
   0x6   :  { %78 = vmatpush.bf16.msra.mxu0 %v64_v12  ;;  %v70_v22 = vand.u32 %v442_v13, %v611_v5  ;;  %v553_v24 = vld [vmem:[%s810_s0 + $0x10] sm:$0xf0]  ;;  %v456_v25 = vld [vmem:[%s810_s0 + $0x30] sm:$0xf]  ;;  %v558_v26 = vld [vmem:[%s810_s0 + $0x38] sm:$0xf0]  ;;  %v426_v28 = vor.u32 %v551_v19, %v423_v20 }
   0x7   :  { %91 = vmatpush.bf16.msra.mxu1 %v67_v17  ;;  %v150_v27 = vand.u32 %v469_v18, %v611_v5  ;;  %v503_v29 = vld [vmem:[%s810_s0 + $0x78] sm:$0xf]  ;;  %v567_v30 = vld [vmem:[%s810_s0 + $0x80] sm:$0x10]  ;;  %v430_v31 = vor.u32 %v553_v24, %v429_v21  ;;  %v668_v32 = vld [vmem:[%s811_s1] sm:$0xf]  ;;  %v457_v37 = vor.u32 %v558_v26, %v456_v25 }
   0x8   :  { %104 = vmatpush.bf16.msra.mxu2 %v70_v22  ;;  %v504_v33 = vor.u32 %v567_v30, %v503_v29  ;;  %v566_v34 = vld [vmem:[%s810_s0 + $0x7c] sm:$0xf]  ;;  %v505_v35 = vld [vmem:[%s810_s0 + $0x84] sm:$0x10]  ;;  %v560_v36 = vld [vmem:[%s810_s0 + $0x4c] sm:$0xf] }
   0x9   :  { %164 = vmatpush.bf16.msra.mxu3 %v150_v27  ;;  %v508_v38 = vor.u32 %v566_v34, %v505_v35  ;;  %v470_v39 = vld [vmem:[%s810_s0 + $0x54] sm:$0x10]  ;;  %v476_v40 = vld [vmem:[%s810_s0 + $0x50] sm:$0xf]  ;;  %v562_v41 = vld [vmem:[%s810_s0 + $0x58] sm:$0x10] }
   0xa   :  { %79 = vmatpush.bf16.msra.mxu0 %v422_v23  ;;  %v239_v42 = vand.u32 %v504_v33, %v611_v5  ;;  %v473_v43 = vor.u32 %v560_v36, %v470_v39  ;;  %v477_v44 = vor.u32 %v562_v41, %v476_v40  ;;  %v491_v45 = vld [vmem:[%s810_s0 + $0x60] sm:$0xf]  ;;  %v564_v46 = vld [vmem:[%s810_s0 + $0x68] sm:$0xf0]  ;;  %v563_v47 = vld [vmem:[%s810_s0 + $0x64] sm:$0xf] }
   0xb   :  { %92 = vmatpush.bf16.msra.mxu1 %v426_v28  ;;  %v242_v48 = vand.u32 %v508_v38, %v611_v5  ;;  %v493_v49 = vld [vmem:[%s810_s0 + $0x6c] sm:$0xf0]  ;;  %v557_v50 = vld [vmem:[%s810_s0 + $0x34] sm:$0xf]  ;;  %v458_v51 = vld [vmem:[%s810_s0 + $0x3c] sm:$0xf0]  ;;  %v492_v60 = vor.u32 %v564_v46, %v491_v45 }
   0xc   :  { %105 = vmatpush.bf16.msra.mxu2 %v430_v31  ;;  %v153_v52 = vand.u32 %v473_v43, %v611_v5  ;;  %v464_v53 = vld [vmem:[%s810_s0 + $0x38] sm:$0xf]  ;;  %v559_v54 = vld [vmem:[%s810_s0 + $0x40] sm:$0xf0]  ;;  %v572_v55 = vld [vmem:[%s810_s0 + $0xac] sm:$0xf]  ;;  %v156_v56 = vand.u32 %v477_v44, %v611_v5  ;;  %v496_v2 = vor.u32 %v563_v47, %v493_v49  ;;  %v461_v3 = vor.u32 %v557_v50, %v458_v51 }
   0xd   :  { %165 = vmatpush.bf16.msra.mxu3 %v457_v37  ;;  %443 = vmatmul.msk.bf16.vlgmr.msra.gmra.mxu0 %vm55_vm2, %v668_v32  ;;  %v540_v57 = vld [vmem:[%s810_s0 + $0xb4] sm:$0x10]  ;;  %v546_v58 = vld [vmem:[%s810_s0 + $0xb0] sm:$0xf]  ;;  %v574_v59 = vld [vmem:[%s810_s0 + $0xb8] sm:$0x10]  ;;  %v465_v12 = vor.u32 %v559_v54, %v464_v53 }
   0xe   :  { %444 = vmatmul.msk.bf16.vlgmr.msra.gmra.mxu1 %vm55_vm2, %v668_v32  ;;  %v543_v61 = vor.u32 %v572_v55, %v540_v57  ;;  %v547_v62 = vor.u32 %v574_v59, %v546_v58  ;;  %v511_v63 = vld [vmem:[%s810_s0 + $0x80] sm:$0xf]  ;;  %v568_v0 = vld [vmem:[%s810_s0 + $0x88] sm:$0x10]  ;;  %v538_v1 = vld [vmem:[%s810_s0 + $0xa8] sm:$0xf]  ;;  %177 = vmatpush.bf16.msrb.mxu0 %v153_v52 }
   0xf   :  { %445 = vmatmul.msk.bf16.vlgmr.msra.gmra.mxu2 %vm55_vm2, %v668_v32  ;;  %v512_v4 = vor.u32 %v568_v0, %v511_v63  ;;  %v573_v6 = vld [vmem:[%s810_s0 + $0xb0] sm:$0x10]  ;;  %v528_v11 = vld [vmem:[%s810_s0 + $0x9c] sm:$0xf0]  ;;  %190 = vmatpush.bf16.msrb.mxu1 %v156_v56  ;;  %v534_v14 = vld [vmem:[%s810_s0 + $0x98] sm:$0xf] }
  0x10   :  { %253 = vmatpush.bf16.msrb.mxu2 %v239_v42  ;;  %478 = vmatmul.msk.bf16.vlgmr.msra.gmra.mxu3 %vm55_vm2, %v668_v32  ;;  %v331_v7 = vand.u32 %v543_v61, %v611_v5  ;;  %v334_v8 = vand.u32 %v547_v62, %v611_v5  ;;  %v539_v9 = vor.u32 %v573_v6, %v538_v1  ;;  %v569_v10 = vld [vmem:[%s810_s0 + $0x94] sm:$0xf]  ;;  %v571_v15 = vld [vmem:[%s810_s0 + $0xa0] sm:$0xf0]  ;;  %v499_v17 = vld [vmem:[%s810_s0 + $0x68] sm:$0xf] }
  0x11   :  { %266 = vmatpush.bf16.msrb.mxu3 %v242_v48  ;;  %v245_v13 = vand.u32 %v512_v4, %v611_v5  ;;  %v565_v18 = vld [vmem:[%s810_s0 + $0x70] sm:$0xf0]  ;;  %v531_v19 = vor.u32 %v569_v10, %v528_v11  ;;  %v526_v20 = vld [vmem:[%s810_s0 + $0x90] sm:$0xf]  ;;  %v570_v21 = vld [vmem:[%s810_s0 + $0x98] sm:$0xf0] }
  0x12   :  { %v328_v16 = vand.u32 %v539_v9, %v611_v5  ;;  %178 = vmatpush.bf16.msrb.mxu0 %v461_v3  ;;  %v535_v5 = vor.u32 %v571_v15, %v534_v14  ;;  %v378_v22 = vld [vmem:[%s812_s2] sm:$0xff]  ;;  %v500_v23 = vor.u32 %v565_v18, %v499_v17  ;;  %v527_v24 = vor.u32 %v570_v21, %v526_v20 }
  0x13   :  { %191 = vmatpush.bf16.msrb.mxu1 %v465_v12  ;;  %v579_v25 = vmov 0   ;;  %vm409_vm5 = vcmask 15368  }
  0x14   :  { %254 = vmatpush.bf16.msrb.mxu2 %v492_v60  ;;  %577 = vset.pattern.permute.xlu0 %v579_v25 }
  0x15   :  { %267 = vmatpush.bf16.msrb.mxu3 %v496_v2  ;;  %381 = vperm.xlu0 %577, %v378_v22  }
  0x16   :  { %279 = vmatpush.bf16.msra.mxu0 %v245_v13 }
  0x17   :  { %342 = vmatpush.bf16.msra.mxu1 %v328_v16 }
  0x18   :  { %355 = vmatpush.bf16.msra.mxu2 %v331_v7 }
  0x19   :  { %368 = vmatpush.bf16.msra.mxu3 %v334_v8 }
  0x1a   :  { %280 = vmatpush.bf16.msra.mxu0 %v500_v23 }
  0x1b   :  { %343 = vmatpush.bf16.msra.mxu1 %v527_v24 }
  0x1c   :  { %356 = vmatpush.bf16.msra.mxu2 %v531_v19 }
  0x1d   :  { %369 = vmatpush.bf16.msra.mxu3 %v535_v5  ;;  %479 = vmatmul.msk.bf16.vlgmr.msrb.gmra.mxu0 %vm55_vm2, %v668_v32 }
  0x1e   :  { %480 = vmatmul.msk.bf16.vlgmr.msrb.gmra.mxu1 %vm55_vm2, %v668_v32 }
  0x1f   :  { %513 = vmatmul.msk.bf16.vlgmr.msrb.gmra.mxu2 %vm55_vm2, %v668_v32 }
  0x20   :  { %514 = vmatmul.msk.bf16.vlgmr.msrb.gmra.mxu3 %vm55_vm2, %v668_v32 }
  0x2d   :  { %515 = vmatmul.msk.bf16.vlgmr.msra.gmra.mxu0 %vm55_vm2, %v668_v32 }
  0x2e   :  { %548 = vmatmul.msk.bf16.vlgmr.msra.gmra.mxu1 %vm55_vm2, %v668_v32 }
  0x2f   :  { %549 = vmatmul.msk.bf16.vlgmr.msra.gmra.mxu2 %vm55_vm2, %v668_v32 }
  0x30   :  { %550 = vmatmul.msk.bf16.vlgmr.msra.gmra.mxu3 %vm55_vm2, %v668_v32 }
  0x87   :  { %v382_v42 = vpop.permute.xlu0 %381 }
  0x8a   :  { %v81_v26 = vpop.f32.mrf.mxu0 }
  0x8b   :  { %v94_v27 = vpop.f32.mrf.mxu1 }
  0x92   :  { %v107_v28 = vpop.f32.mrf.mxu2  ;;  %v83_v29 = vpop.f32.mrf.mxu0 }
  0x93   :  { %v167_v30 = vpop.f32.mrf.mxu3  ;;  %v96_v31 = vpop.f32.mrf.mxu1 }
  0x94   :  { %v197_v41 = vmax.f32 %v81_v26, %v167_v30 }
  0x9a   :  { %v109_v33 = vpop.f32.mrf.mxu2  ;;  %v180_v34 = vpop.f32.mrf.mxu0 }
  0x9b   :  { %v169_v35 = vpop.f32.mrf.mxu3  ;;  %v193_v36 = vpop.f32.mrf.mxu1  ;;  %v198_v49 = vmax.f32 %v94_v27, %v180_v34 }
  0x9c   :  { %v199_v50 = vmax.f32 %v107_v28, %v193_v36 }
  0xa2   :  { %v256_v37 = vpop.f32.mrf.mxu2  ;;  %v182_v38 = vpop.f32.mrf.mxu0 }
  0xa3   :  { %v269_v39 = vpop.f32.mrf.mxu3  ;;  %v195_v40 = vpop.f32.mrf.mxu1  ;;  %v286_v43 = vmax.f32 %v197_v41, %v256_v37 }
  0xa4   :  { %v287_v52 = vmax.f32 %v198_v49, %v269_v39 }
  0xaa   :  { %v258_v44 = vpop.f32.mrf.mxu2  ;;  %v282_v45 = vpop.f32.mrf.mxu0 }
  0xab   :  { %v271_v32 = vpop.f32.mrf.mxu3  ;;  %v345_v46 = vpop.f32.mrf.mxu1  ;;  %v288_v53 = vmax.f32 %v199_v50, %v282_v45 }
  0xac   :  { %v375_v47 = vmax.f32 %v286_v43, %v345_v46 }
  0xae   :  { %v384_v48 = vadd.f32 %v382_v42, %v375_v47 }
  0xb0   :  { %v387_v51 = vmax.f32 %v384_v48, 0.0 }
  0xb2   :  { %390 = vst [vmem:[%s813_s3] sm:$0xff] %v387_v51  ;;  %v358_v54 = vpop.f32.mrf.mxu2  ;;  %v284_v55 = vpop.f32.mrf.mxu0  ;;  %v401_v1 = vmul.f32 %v387_v51, %v387_v51 }
  0xb3   :  { %v376_v56 = vmax.f32 %v287_v52, %v358_v54  ;;  %v371_v57 = vpop.f32.mrf.mxu3  ;;  %v347_v58 = vpop.f32.mrf.mxu1 }
  0xb4   :  { %v377_v59 = vmax.f32 %v288_v53, %v371_v57 }
  0xb5   :  { %v385_v60 = vadd.f32 %v382_v42, %v376_v56 }
  0xb6   :  { %v386_v61 = vadd.f32 %v382_v42, %v377_v59 }
  0xb7   :  { %v388_v62 = vmax.f32 %v385_v60, 0.0 }
  0xb8   :  { %v389_v63 = vmax.f32 %v386_v61, 0.0 }
  0xb9   :  { %391 = vst [vmem:[%s813_s3 + $0x8] sm:$0xff] %v388_v62  ;;  %v394_v0 = vadd.f32 %v388_v62, %v387_v51  ;;  %v402_v2 = vmul.f32 %v388_v62, %v388_v62 }
  0xba   :  { %v360_v3 = vpop.f32.mrf.mxu2  ;;  %393 = vst.msk [vmem:[%s813_s3 + $0x10] sm:$0xff] %vm392_vm3, %v389_v63  ;;  %v395_v4 = vsel %vm392_vm3, %v389_v63, 0.0  ;;  %v403_v6 = vmul.f32 %v389_v63, %v389_v63 }
  0xbb   :  { %v373_v7 = vpop.f32.mrf.mxu3  ;;  %v396_v8 = vadd.f32 %v395_v4, %v394_v0  ;;  %v404_v9 = vadd.f32 %v402_v2, %v401_v1 }
  0xbc   :  { %v405_v10 = vsel %vm392_vm3, %v403_v6, 0.0 }
  0xbd   :  { %397 = vadd.xlane.f32.xlu0 %v396_v8  ;;  %v406_v11 = vadd.f32 %v405_v10, %v404_v9 }
  0xbf   :  { %407 = vadd.xlane.f32.xlu1 %v406_v11 }
 0x130   :  { %v398_v12 = vpop.xlane.xlu0 %397 }
 0x131   :  { %400 = vst.msk [vmem:[%s814_s4] sm:$0xff] %vm399_vm4, %v398_v12 }
 0x132   :  { %v408_v13 = vpop.xlane.xlu1 %407 }
 0x133   :  { %410 = vst.msk [vmem:[%s814_s4] sm:$0xff] %vm409_vm5, %v408_v13 }

// kernel: network_forward.5
= control target key start
LH: loop header
LB: loop body
LE: loop exit
PB: predicated region body
PF: predicated region fallthrough
CT: control target
= control target key end

     0   :  { %vm109_vm0 = vcmask 1042432   ;;  %vm105_vm1 = vcmask 179200   ;;  %s1010_s0 = inlined_call_operand.vmem [shape: bf16[4,150,32], index: 0, kind: input, shape index: {}]   ;;  %s1011_s1 = inlined_call_operand.vmem [shape: bf16[16,150], index: 1, kind: input, shape index: {}]   ;;  %s1012_s2 = inlined_call_operand.vmem [shape: f32[16,1], index: 2, kind: input, shape index: {}]   ;;  %s1013_s3 = inlined_call_operand.vmem [shape: f32[16,32], index: 3, kind: output, shape index: {0}]   ;;  %s1014_s4 = inlined_call_operand.hbm [shape: f32[1,16,2], index: 4, kind: output, shape index: {1}]  }
   0x1   :  { %v754_v0 = vld [vmem:[%s1010_s0 + $0x38] sm:$0xff]  ;;  %v763_v1 = vld [vmem:[%s1010_s0 + $0x84] sm:$0xff]  ;;  %v753_v4 = vld [vmem:[%s1010_s0 + $0x30] sm:$0xff] }
   0x2   :  { %v38_v2 = vld [vmem:[%s1010_s0 + $0x48] sm:$0x7]  ;;  %113 = vmatpush.bf16.msra.mxu0 %v754_v0  ;;  %221 = vmatpush.bf16.msra.mxu2 %v763_v1  ;;  %v651_v5 = vld [vmem:[%s1010_s0 + $0xe0] sm:$0x7]  ;;  %v761_v14 = vld [vmem:[%s1010_s0 + $0x74] sm:$0xff] }
   0x3   :  { %v85_v3 = vunpack.c.l.b16 %v38_v2  ;;  %v762_v7 = vld [vmem:[%s1010_s0 + $0x7c] sm:$0xff]  ;;  %v308_v8 = vunpack.c.l.b16 %v651_v5  ;;  %v752_v12 = vld [vmem:[%s1010_s0 + $0x28] sm:$0xff]  ;;  %v772_v15 = vld [vmem:[%s1010_s0 + $0xd0] sm:$0xff] }
   0x4   :  { %v755_v11 = vld [vmem:[%s1010_s0 + $0x40] sm:$0xff]  ;;  %v773_v17 = vld [vmem:[%s1010_s0 + $0xd8] sm:$0xff]  ;;  %v536_v18 = vld [vmem:[%s1011_s1 + $0x8] sm:$0xf0] }
   0x5   :  { %v95_v6 = vpack.c.b16 %v85_v3, %v85_v3  ;;  %v318_v10 = vpack.c.b16 %v308_v8, %v308_v8  ;;  %v745_v16 = vld [vmem:[%s1011_s1 + $0x4] sm:$0xf]  ;;  %v781_v19 = vld [vmem:[%s1010_s0 + $0x11c] sm:$0xff]  ;;  %v760_v22 = vld [vmem:[%s1010_s0 + $0x6c] sm:$0xff] }
   0x6   :  { %114 = vmatpush.bf16.msra.mxu0 %v753_v4  ;;  %222 = vmatpush.bf16.msra.mxu2 %v762_v7  ;;  %v887_v20 = vor.u32 %v745_v16, %v536_v18  ;;  %v751_v21 = vld [vmem:[%s1010_s0 + $0x20] sm:$0xff]  ;;  %v771_v23 = vld [vmem:[%s1010_s0 + $0xc8] sm:$0xff]  ;;  %v780_v24 = vld [vmem:[%s1010_s0 + $0x114] sm:$0xff] }
   0x7   :  { %v111_v9 = vsel %vm109_vm0, %v95_v6, 0  ;;  %v329_v13 = vsel %vm109_vm0, %v318_v10, 0  ;;  %v750_v25 = vld [vmem:[%s1010_s0 + $0x18] sm:$0xff] }
   0x8   :  { %133 = vmatpush.bf16.msra.mxu1 %v111_v9  ;;  %351 = vmatpush.bf16.msra.mxu3 %v329_v13 }
   0xa   :  { %115 = vmatpush.bf16.msra.mxu0 %v752_v12  ;;  %223 = vmatpush.bf16.msra.mxu2 %v761_v14 }
   0xc   :  { %134 = vmatpush.bf16.msra.mxu1 %v755_v11  ;;  %352 = vmatpush.bf16.msra.mxu3 %v773_v17 }
   0xe   :  { %116 = vmatpush.bf16.msra.mxu0 %v751_v21 }
   0xf   :  { %576 = vmatmul.msk.bf16.vlgmr.msra.gmra.mxu1 %vm105_vm1, %v887_v20 }
  0x10   :  { %331 = vmatpush.bf16.msrb.mxu1 %v772_v15  ;;  %441 = vmatpush.bf16.msrb.mxu3 %v781_v19 }
  0x11   :  { %10 = vsyncpa [#allocation3], 0  ;;  %224 = vmatpush.bf16.msra.mxu2 %v760_v22  ;;  %v759_v26 = vld [vmem:[%s1010_s0 + $0x64] sm:$0xff]  ;;  %688 = vmatmul.msk.bf16.vlgmr.msra.gmra.mxu3 %vm105_vm1, %v887_v20  ;;  %v749_v28 = vld [vmem:[%s1010_s0 + $0x10] sm:$0xff]  ;;  %v814_v35 = vmov 0   ;;  %vm487_vm2 = vcmask 261120  }
  0x12   :  { %v770_v27 = vld [vmem:[%s1010_s0 + $0xc0] sm:$0xff]  ;;  %v779_v29 = vld [vmem:[%s1010_s0 + $0x10c] sm:$0xff]  ;;  %117 = vmatpush.bf16.msra.mxu0 %v750_v25  ;;  %v595_v30 = vld [vmem:[%s1010_s0 + $0x94] sm:$0x7]  ;;  %787 = vset.pattern.permute.xlu0 %v814_v35  ;;  %vm496_vm3 = vcmask 7168   ;;  %vm507_vm4 = vcmask 15368  }
  0x13   :  { %v707_v31 = vld [vmem:[%s1010_s0 + $0x12c] sm:$0x7]  ;;  %v471_v32 = vld [vmem:[%s1012_s2] sm:$0xff]  ;;  %v769_v34 = vld [vmem:[%s1010_s0 + $0xb8] sm:$0xff]  ;;  %v198_v37 = vunpack.c.l.b16 %v595_v30  ;;  %s815_s30 = smov [#allocation2]   ;;  %s518_s8 = sshll.u32 %s1014_s4, 4  ;;  %s519_s8 = int_to_ptr.hbm [resolvable:$true] %s518_s8 }
  0x14   :  { %332 = vmatpush.bf16.msrb.mxu1 %v771_v23  ;;  %442 = vmatpush.bf16.msrb.mxu3 %v780_v24  ;;  %v758_v33 = vld [vmem:[%s1010_s0 + $0x5c] sm:$0xff]  ;;  %v778_v36 = vld [vmem:[%s1010_s0 + $0x104] sm:$0xff]  ;;  %v418_v38 = vunpack.c.l.b16 %v707_v31  ;;  %v757_v40 = vld [vmem:[%s1010_s0 + $0x54] sm:$0xff]  ;;  %s516_s5 = sshll.u32 %s815_s30, 4  ;;  %s817_s9 = smov 8   ;;  %s517_s5 = int_to_ptr.vmem [resolvable:$true] %s516_s5 }
  0x15   :  { %225 = vmatpush.bf16.msra.mxu2 %v759_v26  ;;  %475 = vperm.xlu0 %787, %v471_v32   ;;  %v748_v39 = vld [vmem:[%s1010_s0 + $0x8] sm:$0xff]  ;;  %v768_v41 = vld [vmem:[%s1010_s0 + $0xb0] sm:$0xff]  ;;  %v747_v42 = vld [vmem:[%s1010_s0] sm:$0xff]  ;;  %v208_v44 = vpack.c.b16 %v198_v37, %v198_v37 }
  0x16   :  { %118 = vmatpush.bf16.msra.mxu0 %v749_v28  ;;  %v777_v43 = vld [vmem:[%s1010_s0 + $0xfc] sm:$0xff]  ;;  %v428_v45 = vpack.c.b16 %v418_v38, %v418_v38  ;;  %v746_v47 = vld [vmem:[%s1011_s1 + $0x4] sm:$0xf0]  ;;  %v756_v49 = vld [vmem:[%s1010_s0 + $0x4c] sm:$0xff] }
  0x17   :  { %v534_v46 = vld [vmem:[%s1011_s1] sm:$0xf]  ;;  %v472_v48 = vld [vmem:[%s1012_s2 + $0x8] sm:$0xff]  ;;  %v219_v52 = vsel %vm109_vm0, %v208_v44, 0  ;;  %v776_v53 = vld [vmem:[%s1010_s0 + $0xf4] sm:$0xff] }
  0x18   :  { %333 = vmatpush.bf16.msrb.mxu1 %v770_v27  ;;  %443 = vmatpush.bf16.msrb.mxu3 %v779_v29  ;;  %v767_v50 = vld [vmem:[%s1010_s0 + $0xa8] sm:$0xff]  ;;  %v535_v51 = vor.u32 %v746_v47, %v534_v46  ;;  %v439_v54 = vsel %vm109_vm0, %v428_v45, 0  ;;  %v766_v55 = vld [vmem:[%s1010_s0 + $0xa0] sm:$0xff]  ;;  %v765_v59 = vld [vmem:[%s1010_s0 + $0x98] sm:$0xff] }
  0x19   :  { %226 = vmatpush.bf16.msra.mxu2 %v758_v33  ;;  %v764_v56 = vld [vmem:[%s1010_s0 + $0x8c] sm:$0xff]  ;;  %v782_v57 = vld [vmem:[%s1010_s0 + $0x124] sm:$0xff] }
  0x1a   :  { %119 = vmatpush.bf16.msra.mxu0 %v748_v39  ;;  %v775_v58 = vld [vmem:[%s1010_s0 + $0xec] sm:$0xff]  ;;  %v774_v60 = vld [vmem:[%s1010_s0 + $0xe4] sm:$0xff] }
  0x1c   :  { %334 = vmatpush.bf16.msrb.mxu1 %v769_v34  ;;  %444 = vmatpush.bf16.msrb.mxu3 %v778_v36 }
  0x1d   :  { %227 = vmatpush.bf16.msra.mxu2 %v757_v40  ;;  %480 = vperm.xlu0 %787, %v472_v48  }
  0x1e   :  { %120 = vmatpush.bf16.msra.mxu0 %v747_v42 }
  0x20   :  { %335 = vmatpush.bf16.msrb.mxu1 %v768_v41  ;;  %445 = vmatpush.bf16.msrb.mxu3 %v777_v43 }
  0x21   :  { %228 = vmatpush.bf16.msra.mxu2 %v756_v49  ;;  %121 = vmatmul.bf16.vlgmr.msra.gmra.mxu0 %v535_v51 }
  0x22   :  { %461 = vmatpush.bf16.msrb.mxu0 %v439_v54 }
  0x24   :  { %336 = vmatpush.bf16.msrb.mxu1 %v767_v50  ;;  %446 = vmatpush.bf16.msrb.mxu3 %v776_v53 }
  0x25   :  { %241 = vmatpush.bf16.msrb.mxu2 %v219_v52 }
  0x26   :  { %229 = vmatmul.bf16.vlgmr.msra.gmra.mxu2 %v535_v51  ;;  %462 = vmatpush.bf16.msrb.mxu0 %v782_v57 }
  0x28   :  { %337 = vmatpush.bf16.msrb.mxu1 %v766_v55  ;;  %447 = vmatpush.bf16.msrb.mxu3 %v775_v58 }
  0x29   :  { %242 = vmatpush.bf16.msrb.mxu2 %v764_v56 }
  0x2c   :  { %338 = vmatpush.bf16.msrb.mxu1 %v765_v59  ;;  %448 = vmatpush.bf16.msrb.mxu3 %v774_v60 }
  0x2f   :  { %339 = vmatmul.bf16.vlgmr.msrb.gmra.mxu1 %v535_v51  ;;  %449 = vmatmul.bf16.vlgmr.msrb.gmra.mxu3 %v535_v51 }
  0x31   :  { %744 = vmatmul.msk.bf16.vlgmr.msrb.gmra.mxu0 %vm105_vm1, %v887_v20 }
  0x36   :  { %632 = vmatmul.msk.bf16.vlgmr.msrb.gmra.mxu2 %vm105_vm1, %v887_v20 }
  0x87   :  { %v476_v15 = vpop.permute.xlu0 %475 }
  0x8c   :  { %v136_v61 = vpop.f32.mrf.mxu1 }
  0x8f   :  { %v481_v33 = vpop.permute.xlu0 %480 }
  0x94   :  { %v354_v62 = vpop.f32.mrf.mxu3  ;;  %v138_v1 = vpop.f32.mrf.mxu1 }
  0x9c   :  { %v356_v2 = vpop.f32.mrf.mxu3 }
  0x9e   :  { %v122_v63 = vpop.f32.mrf.mxu0 }
  0x9f   :  { %v137_v9 = vadd.f32 %v136_v61, %v122_v63 }
  0xa6   :  { %v124_v3 = vpop.f32.mrf.mxu0 }
  0xa7   :  { %v139_v19 = vadd.f32 %v138_v1, %v124_v3 }
  0xa9   :  { %v230_v0 = vpop.f32.mrf.mxu2 }
  0xac   :  { %v340_v5 = vpop.f32.mrf.mxu1 }
  0xad   :  { %v355_v11 = vadd.f32 %v354_v62, %v340_v5 }
  0xae   :  { %v464_v6 = vpop.f32.mrf.mxu0 }
  0xb1   :  { %v232_v4 = vpop.f32.mrf.mxu2 }
  0xb2   :  { %v450_v7 = vpop.f32.mrf.mxu3 }
  0xb3   :  { %v465_v12 = vadd.f32 %v464_v6, %v450_v7 }
  0xb4   :  { %v342_v17 = vpop.f32.mrf.mxu1 }
  0xb5   :  { %v357_v24 = vadd.f32 %v356_v2, %v342_v17 }
  0xb6   :  { %v466_v23 = vpop.f32.mrf.mxu0 }
  0xb9   :  { %v244_v8 = vpop.f32.mrf.mxu2 }
  0xba   :  { %v245_v10 = vadd.f32 %v244_v8, %v230_v0  ;;  %v452_v22 = vpop.f32.mrf.mxu3 }
  0xbb   :  { %v467_v27 = vadd.f32 %v466_v23, %v452_v22 }
  0xbc   :  { %v249_v13 = vmax.f32 %v137_v9, %v245_v10 }
  0xbe   :  { %v359_v14 = vmax.f32 %v249_v13, %v355_v11 }
  0xc0   :  { %v469_v16 = vmax.f32 %v359_v14, %v465_v12 }
  0xc1   :  { %v246_v18 = vpop.f32.mrf.mxu2 }
  0xc2   :  { %v247_v20 = vadd.f32 %v246_v18, %v232_v4  ;;  %v483_v21 = vadd.f32 %v476_v15, %v469_v16 }
  0xc4   :  { %v250_v25 = vmax.f32 %v139_v19, %v247_v20  ;;  %v485_v26 = vmax.f32 %v483_v21, 0.0 }
  0xc6   :  { %v360_v28 = vmax.f32 %v250_v25, %v357_v24  ;;  %v490_v29 = vsel %vm487_vm2, %v485_v26, 0.0  ;;  %488 = vst.msk [vmem:[%s1013_s3] sm:$0xff] %vm487_vm2, %v485_v26  ;;  %v499_v30 = vmul.f32 %v485_v26, %v485_v26 }
  0xc7   :  { %491 = vadd.xlane.f32.xlu1 %v490_v29 }
  0xc8   :  { %v470_v31 = vmax.f32 %v360_v28, %v467_v27  ;;  %v501_v32 = vsel %vm487_vm2, %v499_v30, 0.0 }
  0xc9   :  { %502 = vadd.xlane.f32.xlu2 %v501_v32 }
  0xca   :  { %v484_v34 = vadd.f32 %v481_v33, %v470_v31 }
  0xcc   :  { %v486_v35 = vmax.f32 %v484_v34, 0.0 }
  0xce   :  { %489 = vst.msk [vmem:[%s1013_s3 + $0x8] sm:$0xff] %vm487_vm2, %v486_v35  ;;  %v493_v36 = vsel %vm487_vm2, %v486_v35, 0.0  ;;  %v500_v37 = vmul.f32 %v486_v35, %v486_v35  ;;  %s816_s3 = smov 128  }
  0xcf   :  { %494 = vadd.xlane.f32.xlu1 %v493_v36 }
  0xd0   :  { %v504_v38 = vsel %vm487_vm2, %v500_v37, 0.0 }
  0xd1   :  { %505 = vadd.xlane.f32.xlu2 %v504_v38 }
 0x13a   :  { %v492_v39 = vpop.xlane.xlu1 %491 }
 0x13b   :  { %497 = vst.msk [vmem:[#allocation2] sm:$0xff] %vm496_vm3, %v492_v39 }
 0x13c   :  { %v503_v40 = vpop.xlane.xlu2 %502 }
 0x13d   :  { %508 = vst.msk [vmem:[#allocation2] sm:$0xff] %vm507_vm4, %v503_v40 }
 0x142   :  { %v495_v41 = vpop.xlane.xlu1 %494 }
 0x143   :  { %498 = vst.msk [vmem:[#allocation2 + $0x8] sm:$0xff] %vm496_vm3, %v495_v41 }
 0x144   :  { %v506_v42 = vpop.xlane.xlu2 %505 }
 0x145   :  { %509 = vst.msk [vmem:[#allocation2 + $0x8] sm:$0xff] %vm507_vm4, %v506_v42 }
 0x146   :  { %524 = dma.vmem_to_hbm [thread:$0]  %s517_s5, 256, %s519_s8, [#allocation3], %s816_s3, %s816_s3, %s817_s9  }
 0x147   :  { %812 = dma.done.wait [#allocation3], 256  }
 0x148   :  { %813 = vsyncadd [#allocation3], 4294967040 }
 0x149   :  { %531 = vsyncpa [#allocation3], 1 }

// kernel: network_forward.6
= control target key start
LH: loop header
LB: loop body
LE: loop exit
PB: predicated region body
PF: predicated region fallthrough
CT: control target
= control target key end

     0   :  { %vm123_vm0 = vcmask 523264   ;;  %vm154_vm1 = vcmask 1041408   ;;  %s318_s1 = inlined_call_operand.vmem [shape: bf16[192,128], index: 1, kind: input, shape index: {}]   ;;  %s319_s0 = inlined_call_operand.vmem [shape: bf16[2,192], index: 0, kind: input, shape index: {}]   ;;  %s320_s2 = inlined_call_operand.vmem [shape: f32[1,128], index: 2, kind: input, shape index: {}]   ;;  %s321_s3 = inlined_call_operand.vmem [shape: f32[2,128], index: 3, kind: output, shape index: {0}]   ;;  %s322_s4 = inlined_call_operand.vmem [shape: f32[1,2,128], index: 4, kind: output, shape index: {1}]  }
   0x1   :  { %v236_v0 = vld [vmem:[%s318_s1 + $0x38] sm:$0xff]  ;;  %v235_v2 = vld [vmem:[%s318_s1 + $0x30] sm:$0xff]  ;;  %v17_v4 = vld [vmem:[%s319_s0] sm:$0x3] }
   0x2   :  { %v240_v1 = vld [vmem:[%s318_s1 + $0x58] sm:$0xff]  ;;  %126 = vmatpush.bf16.msra.mxu0 %v236_v0  ;;  %v239_v3 = vld [vmem:[%s318_s1 + $0x50] sm:$0xff]  ;;  %47 = vst [vmem:[#allocation1] ss:$9 sm:$0xff] %v17_v4  ;;  %v234_v5 = vld [vmem:[%s318_s1 + $0x28] sm:$0xff] }
   0x3   :  { %143 = vmatpush.bf16.msra.mxu1 %v240_v1  ;;  %v238_v6 = vld [vmem:[%s318_s1 + $0x48] sm:$0xff]  ;;  %v233_v7 = vld [vmem:[%s318_s1 + $0x20] sm:$0xff]  ;;  %v232_v9 = vld [vmem:[%s318_s1 + $0x18] sm:$0xff] }
   0x4   :  { %v237_v8 = vld [vmem:[%s318_s1 + $0x40] sm:$0xff]  ;;  %v231_v11 = vld [vmem:[%s318_s1 + $0x10] sm:$0xff]  ;;  %v230_v12 = vld [vmem:[%s318_s1 + $0x8] sm:$0xff] }
   0x5   :  { %v229_v13 = vld [vmem:[%s318_s1] sm:$0xff] }
   0x6   :  { %127 = vmatpush.bf16.msra.mxu0 %v235_v2  ;;  %v241_v17 = vld [vmem:[%s320_s2] ss:$0 sm:$0xff] }
   0x7   :  { %144 = vmatpush.bf16.msra.mxu1 %v239_v3 }
   0x9   :  { %v49_v10 = vld [vmem:[#allocation1 + $0x9] sm:$0xff]  ;;  %v48_v14 = vld [vmem:[#allocation1] sm:$0xff] }
   0xa   :  { %128 = vmatpush.bf16.msra.mxu0 %v234_v5 }
   0xb   :  { %145 = vmatpush.bf16.msra.mxu1 %v238_v6 }
   0xe   :  { %129 = vmatpush.bf16.msra.mxu0 %v233_v7 }
   0xf   :  { %146 = vmatpush.bf16.msra.mxu1 %v237_v8 }
  0x12   :  { %130 = vmatpush.bf16.msra.mxu0 %v232_v9  ;;  %228 = vmatmul.msk.bf16.vlgmr.msra.gmra.mxu1 %vm123_vm0, %v49_v10 }
  0x16   :  { %131 = vmatpush.bf16.msra.mxu0 %v231_v11 }
  0x1a   :  { %132 = vmatpush.bf16.msra.mxu0 %v230_v12 }
  0x1e   :  { %133 = vmatpush.bf16.msra.mxu0 %v229_v13 }
  0x21   :  { %134 = vmatmul.bf16.vlgmr.msra.gmra.mxu0 %v48_v14 }
  0x8f   :  { %v148_v15 = vpop.f32.mrf.mxu1 }
  0x97   :  { %v150_v16 = vpop.f32.mrf.mxu1 }
  0x9e   :  { %v135_v18 = vpop.f32.mrf.mxu0 }
  0x9f   :  { %v136_v19 = vadd.f32 %v241_v17, %v135_v18 }
  0xa1   :  { %v149_v20 = vadd.f32 %v148_v15, %v136_v19 }
  0xa3   :  { %v152_v21 = vmax.f32 %v149_v20, 0.0 }
  0xa5   :  { %153 = vst [vmem:[%s321_s3] sm:$0x3] %v152_v21  ;;  %v155_v22 = vsel %vm154_vm1, %v152_v21, 0.0  ;;  %v163_v23 = vmul.f32 %v152_v21, %v152_v21 }
  0xa6   :  { %v156_v24 = vrot.slane %v155_v22, 4  ;;  %v137_v25 = vpop.f32.mrf.mxu0 }
  0xa7   :  { %v164_v26 = vsel %vm154_vm1, %v163_v23, 0.0 }
  0xa8   :  { %v157_v27 = vadd.f32 %v156_v24, %v155_v22  ;;  %v165_v28 = vrot.slane %v164_v26, 4 }
  0xaa   :  { %v158_v29 = vrot.slane %v157_v27, 2  ;;  %v166_v30 = vadd.f32 %v165_v28, %v164_v26 }
  0xac   :  { %v159_v31 = vadd.f32 %v158_v29, %v157_v27  ;;  %v167_v32 = vrot.slane %v166_v30, 2 }
  0xae   :  { %v160_v33 = vrot.slane %v159_v31, 1  ;;  %v168_v34 = vadd.f32 %v167_v32, %v166_v30 }
  0xb0   :  { %v161_v35 = vadd.f32 %v160_v33, %v159_v31  ;;  %v169_v36 = vrot.slane %v168_v34, 1 }
  0xb2   :  { %162 = vst [vmem:[%s322_s4] sm:$0x1] %v161_v35  ;;  %v170_v37 = vadd.f32 %v169_v36, %v168_v34 }
  0xb4   :  { %171 = vst [vmem:[%s322_s4 + $0x1] sm:$0x1] %v170_v37 }

// kernel: network_forward.7
= control target key start
LH: loop header
LB: loop body
LE: loop exit
PB: predicated region body
PF: predicated region fallthrough
CT: control target
= control target key end

     0   :  { %s347_s0 = inlined_call_operand.vmem [shape: f32[2,128], index: 0, kind: input, shape index: {}]   ;;  %s348_s1 = inlined_call_operand.vmem [shape: bf16[128,64], index: 1, kind: input, shape index: {}]   ;;  %s349_s2 = inlined_call_operand.vmem [shape: f32[1,64], index: 2, kind: input, shape index: {}]   ;;  %s350_s3 = inlined_call_operand.vmem [shape: bf16[64,10], index: 3, kind: input, shape index: {}]   ;;  %s351_s4 = inlined_call_operand.vmem [shape: f32[1,10], index: 4, kind: input, shape index: {}]   ;;  %s352_s5 = inlined_call_operand.hbm [shape: f32[2,10], index: 5, kind: output, shape index: {}]  }
   0x1   :  { %v234_v0 = vld [vmem:[%s348_s1 + $0x38] sm:$0xff]  ;;  %v233_v1 = vld [vmem:[%s348_s1 + $0x30] sm:$0xff] }
   0x2   :  { %92 = vmatpush.bf16.msra.mxu0 %v234_v0  ;;  %v238_v2 = vld [vmem:[%s350_s3 + $0x18] sm:$0xff] }
   0x3   :  { %10 = vsyncpa [#allocation3], 0  ;;  %151 = vmatpush.bf16.msra.mxu1 %v238_v2  ;;  %v237_v3 = vld [vmem:[%s350_s3 + $0x10] sm:$0xff]  ;;  %v232_v4 = vld [vmem:[%s348_s1 + $0x28] sm:$0xff]  ;;  %vm143_vm0 = vcmask 523264   ;;  %s268_s21 = smov [#allocation2]  }
   0x4   :  { %v231_v5 = vld [vmem:[%s348_s1 + $0x20] sm:$0xff]  ;;  %v230_v6 = vld [vmem:[%s348_s1 + $0x18] sm:$0xff]  ;;  %v229_v7 = vld [vmem:[%s348_s1 + $0x10] sm:$0xff]  ;;  %s167_s22 = sshll.u32 %s268_s21, 4  ;;  %s169_s24 = sshll.u32 %s352_s5, 4  ;;  %vm160_vm1 = vcmask 74752   ;;  %s168_s22 = int_to_ptr.vmem [resolvable:$true] %s167_s22  ;;  %s170_s24 = int_to_ptr.hbm [resolvable:$true] %s169_s24 }
   0x5   :  { %v228_v8 = vld [vmem:[%s348_s1 + $0x8] sm:$0xff]  ;;  %v227_v9 = vld [vmem:[%s348_s1] sm:$0xff] }
   0x6   :  { %93 = vmatpush.bf16.msra.mxu0 %v233_v1  ;;  %v22_v10 = vld [vmem:[%s347_s0] sm:$0x3]  ;;  %v236_v12 = vld [vmem:[%s350_s3 + $0x8] sm:$0xff] }
   0x7   :  { %152 = vmatpush.bf16.msra.mxu1 %v237_v3  ;;  %v23_v11 = vpack.c.bf16 %v22_v10, %v22_v10  ;;  %v235_v13 = vld [vmem:[%s350_s3] sm:$0xff] }
   0x8   :  { %v240_v14 = vld [vmem:[%s349_s2] ss:$0 sm:$0xff] }
   0x9   :  { %v241_v20 = vld [vmem:[%s351_s4] ss:$0 sm:$0xff] }
   0xa   :  { %94 = vmatpush.bf16.msra.mxu0 %v232_v4 }
   0xb   :  { %153 = vmatpush.bf16.msra.mxu1 %v236_v12 }
   0xe   :  { %95 = vmatpush.bf16.msra.mxu0 %v231_v5 }
   0xf   :  { %154 = vmatpush.bf16.msra.mxu1 %v235_v13 }
  0x12   :  { %96 = vmatpush.bf16.msra.mxu0 %v230_v6 }
  0x16   :  { %97 = vmatpush.bf16.msra.mxu0 %v229_v7 }
  0x1a   :  { %98 = vmatpush.bf16.msra.mxu0 %v228_v8 }
  0x1e   :  { %99 = vmatpush.bf16.msra.mxu0 %v227_v9 }
  0x21   :  { %100 = vmatmul.bf16.vlgmr.msra.gmra.mxu0 %v23_v11 }
  0x9e   :  { %v101_v15 = vpop.f32.mrf.mxu0 }
  0x9f   :  { %v102_v16 = vadd.f32 %v240_v14, %v101_v15 }
  0xa1   :  { %v105_v17 = vmax.f32 %v102_v16, 0.0 }
  0xa3   :  { %v106_v18 = vpack.c.bf16 %v105_v17, %v105_v17 }
  0xa5   :  { %226 = vmatmul.msk.bf16.vlgmr.msra.gmra.mxu1 %vm143_vm0, %v106_v18 }
  0xa6   :  { %v103_v19 = vpop.f32.mrf.mxu0 }
 0x122   :  { %v156_v21 = vpop.f32.mrf.mxu1 }
 0x123   :  { %v157_v22 = vadd.f32 %v241_v20, %v156_v21 }
 0x125   :  { %161 = vst.msk [vmem:[#allocation2] sm:$0x3] %vm160_vm1, %v157_v22 }
 0x126   :  { %172 = dma.vmem_to_hbm [thread:$0]  %s168_s22, 32, %s170_s24, [#allocation3]  }
 0x12a   :  { %v158_v23 = vpop.f32.mrf.mxu1 }
 0x12b   :  { %266 = dma.done.wait [#allocation3], 32  }
 0x12c   :  { %267 = vsyncadd [#allocation3], 4294967264 }
 0x12d   :  { %177 = vsyncpa [#allocation3], 1 }

</bundles_post_ra>
